<compile_context>
chip_gen: v6e
topology: v6e:2x2x1
jax: 0.10.0
libtpu: 0.0.40
codegen_flags: <defaults>
</compile_context>

<pallas_src>
import functools

import jax
import jax.numpy as jnp
from jax.experimental import pallas as pl
from jax.experimental.pallas import tpu as pltpu

NUM_OBS = 26
NUM_ACT = 9
HIDDEN = 256
NEG_SLOPE = 0.01        # PyTorch nn.LeakyReLU default
DEFAULT_TILE_B = 1024   # batch tile (multiple of 16 for bf16 sublane packing)


def _round_up(n, m):
    return ((n + m - 1) // m) * m


def _leaky_relu(x):
    return jnp.where(x > 0, x, NEG_SLOPE * x)


def mlp_kernel(x_ref, w1_ref, b1_ref, w2_ref, b2_ref, w3_ref, b3_ref, o_ref):
    # x_ref: (TB, 26) f32; w* bf16 (VMEM-resident); b* f32; o_ref: (TB, 9) f32
    x = x_ref[...].astype(jnp.bfloat16)  # in-kernel cast: free VPU work, no extra HBM pass
    h1 = jnp.dot(x, w1_ref[...], preferred_element_type=jnp.float32) + b1_ref[...]
    h1 = _leaky_relu(h1).astype(jnp.bfloat16)
    h2 = jnp.dot(h1, w2_ref[...], preferred_element_type=jnp.float32) + b2_ref[...]
    h2 = _leaky_relu(h2).astype(jnp.bfloat16)
    o_ref[...] = jnp.dot(h2, w3_ref[...], preferred_element_type=jnp.float32) + b3_ref[...]


def prepare_params(params):
    """One-time parameter conversion (call once, reuse every step):
    bf16 MXU weights, f32 biases shaped (1, out_features)."""
    w1, b1, w2, b2, w3, b3 = params
    return (
        w1.astype(jnp.bfloat16), b1.astype(jnp.float32).reshape(1, HIDDEN),
        w2.astype(jnp.bfloat16), b2.astype(jnp.float32).reshape(1, HIDDEN),
        w3.astype(jnp.bfloat16), b3.astype(jnp.float32).reshape(1, NUM_ACT),
    )


@functools.partial(jax.jit, static_argnames=("tile_b",))
def net_forward(x, prepared, *, tile_b=DEFAULT_TILE_B):
    """x: (B, NUM_OBS) f32; prepared: output of prepare_params().
    Returns (B, NUM_ACT) f32 Q-values."""
    w1, b1, w2, b2, w3, b3 = prepared
    B = x.shape[0]

    # Batch tile: multiple of 16; ragged batches handled by Pallas partial final blocks.
    TB = min(tile_b, _round_up(B, 16))
    nb = pl.cdiv(B, TB)
    # Keep >= 2 tiles when there is enough work so "parallel" can use both TCs on v7x.
    if nb < 2 and B > 2 * 16:
        TB = _round_up(pl.cdiv(B, 2), 16)
        nb = pl.cdiv(B, TB)

    tiled = lambda shape: pl.BlockSpec(shape, lambda i: (i, 0))      # moves with batch
    resident = lambda shape: pl.BlockSpec(shape, lambda i: (0, 0))   # loaded once, stays in VMEM

    return pl.pallas_call(
        mlp_kernel,
        grid=(nb,),
        out_shape=jax.ShapeDtypeStruct((B, NUM_ACT), jnp.float32),
        in_specs=[
            tiled((TB, NUM_OBS)),
            resident((NUM_OBS, HIDDEN)), resident((1, HIDDEN)),
            resident((HIDDEN, HIDDEN)), resident((1, HIDDEN)),
            resident((HIDDEN, NUM_ACT)), resident((1, NUM_ACT)),
        ],
        out_specs=tiled((TB, NUM_ACT)),
        compiler_params=pltpu.CompilerParams(
            dimension_semantics=("parallel",),
            vmem_limit_bytes=32 * 1024 * 1024,
        ),
    )(x, w1, b1, w2, b2, w3, b3)


def init_params(key):
    """Deterministic init mimicking PyTorch Linear's U(-1/sqrt(fan_in), 1/sqrt(fan_in))."""
    ks = jax.random.split(key, 6)

    def lin(kw, kb, fan_in, fan_out):
        bound = 1.0 / jnp.sqrt(fan_in)
        w = jax.random.uniform(kw, (fan_in, fan_out), jnp.float32, -bound, bound)
        b = jax.random.uniform(kb, (1, fan_out), jnp.float32, -bound, bound)
        return w, b

    w1, b1 = lin(ks[0], ks[1], NUM_OBS, HIDDEN)
    w2, b2 = lin(ks[2], ks[3], HIDDEN, HIDDEN)
    w3, b3 = lin(ks[4], ks[5], HIDDEN, NUM_ACT)
    return (w1, b1, w2, b2, w3, b3)


def reference_forward_bf16(x, params):
    """Same math as the kernel: bf16 MXU operands, f32 accumulate/epilogue."""
    w1, b1, w2, b2, w3, b3 = params
    xb = x.astype(jnp.bfloat16)
    h1 = jnp.dot(xb, w1.astype(jnp.bfloat16), preferred_element_type=jnp.float32) + b1
    h1 = jax.nn.leaky_relu(h1, NEG_SLOPE).astype(jnp.bfloat16)
    h2 = jnp.dot(h1, w2.astype(jnp.bfloat16), preferred_element_type=jnp.float32) + b2
    h2 = jax.nn.leaky_relu(h2, NEG_SLOPE).astype(jnp.bfloat16)
    return jnp.dot(h2, w3.astype(jnp.bfloat16), preferred_element_type=jnp.float32) + b3


def reference_forward_f32(x, params):
    w1, b1, w2, b2, w3, b3 = params
    h1 = jax.nn.leaky_relu(x @ w1 + b1, NEG_SLOPE)
    h2 = jax.nn.leaky_relu(h1 @ w2 + b2, NEG_SLOPE)
    return h2 @ w3 + b3


if __name__ == "__main__":
    key = jax.random.PRNGKey(0)
    k_param, k_x1, k_x2 = jax.random.split(key, 3)

    params = init_params(k_param)
    prepared = jax.block_until_ready(prepare_params(params))   # one-time weight prep

    # Small inference-style batch (single partial tile: TB=16, B=8).
    B1 = 8
    x1 = jax.random.normal(k_x1, (B1, NUM_OBS), jnp.float32)
    out1 = jax.block_until_ready(net_forward(x1, prepared))
    ref1_bf = reference_forward_bf16(x1, params)
    ref1_f32 = reference_forward_f32(x1, params)
    assert out1.shape == (B1, NUM_ACT), out1.shape
    assert jnp.allclose(out1, ref1_bf, atol=2e-3, rtol=2e-3), "mismatch vs bf16 reference (B=8)"
    assert jnp.allclose(out1, ref1_f32, atol=5e-2, rtol=5e-2), "mismatch vs f32 reference (B=8)"

    # Ragged batch: exercises the multi-tile grid + partial final block (no jnp.pad of x).
    B2 = 300
    x2 = jax.random.normal(k_x2, (B2, NUM_OBS), jnp.float32)
    out2 = jax.block_until_ready(net_forward(x2, prepared))
    ref2_bf = reference_forward_bf16(x2, params)
    assert out2.shape == (B2, NUM_ACT), out2.shape
    assert jnp.allclose(out2, ref2_bf, atol=2e-3, rtol=2e-3), "mismatch vs bf16 reference (B=300)"

    print("KERNEL_OK")
</pallas_src>

<mosaic_0001>
module attributes {stable_mosaic.version = 11 : i64} {
  func.func @mlp_kernel(%arg0: i32, %arg1: memref<16x26xf32, #tpu.memory_space<vmem>>, %arg2: memref<26x256xbf16, #tpu.memory_space<vmem>>, %arg3: memref<1x256xf32, #tpu.memory_space<vmem>>, %arg4: memref<256x256xbf16, #tpu.memory_space<vmem>>, %arg5: memref<1x256xf32, #tpu.memory_space<vmem>>, %arg6: memref<256x9xbf16, #tpu.memory_space<vmem>>, %arg7: memref<1x9xf32, #tpu.memory_space<vmem>>, %arg8: memref<16x9xf32, #tpu.memory_space<vmem>>) attributes {dimension_semantics = [#tpu.dimension_semantics<parallel>], iteration_bounds = array<i64: 1>, scalar_prefetch = 0 : i64, scratch_operands = 0 : i64, tpu.core_type = #tpu.core_type<tc>, window_params = [{transform_indices = @transform_0, window_bounds = array<i64: 16, 26>}, {pipeline_mode = #tpu.pipeline_mode<synchronous>, transform_indices = @transform_1, window_bounds = array<i64: 26, 256>}, {pipeline_mode = #tpu.pipeline_mode<synchronous>, transform_indices = @transform_2, window_bounds = array<i64: 1, 256>}, {pipeline_mode = #tpu.pipeline_mode<synchronous>, transform_indices = @transform_3, window_bounds = array<i64: 256, 256>}, {pipeline_mode = #tpu.pipeline_mode<synchronous>, transform_indices = @transform_4, window_bounds = array<i64: 1, 256>}, {pipeline_mode = #tpu.pipeline_mode<synchronous>, transform_indices = @transform_5, window_bounds = array<i64: 256, 9>}, {pipeline_mode = #tpu.pipeline_mode<synchronous>, transform_indices = @transform_6, window_bounds = array<i64: 1, 9>}, {transform_indices = @transform_7, window_bounds = array<i64: 16, 9>}]} {
    %c0 = arith.constant 0 : index
    %c0_0 = arith.constant 0 : index
    %0 = vector.load %arg1[%c0, %c0_0] : memref<16x26xf32, #tpu.memory_space<vmem>>, vector<16x26xf32>
    %1 = arith.truncf %0 : vector<16x26xf32> to vector<16x26xbf16>
    %c0_1 = arith.constant 0 : index
    %c0_2 = arith.constant 0 : index
    %2 = vector.load %arg2[%c0_1, %c0_2] : memref<26x256xbf16, #tpu.memory_space<vmem>>, vector<26x256xbf16>
    %cst = arith.constant dense<0.000000e+00> : vector<16x256xf32>
    %3 = tpu.matmul %1, %2, %cst {dimension_numbers = #tpu.dot_dimension_numbers<[1], [0], [0], [1], [0, 0, 1, 1], [], []>} : vector<16x26xbf16>, vector<26x256xbf16>, vector<16x256xf32> -> vector<16x256xf32>
    %c0_3 = arith.constant 0 : index
    %c0_4 = arith.constant 0 : index
    %4 = vector.load %arg3[%c0_3, %c0_4] : memref<1x256xf32, #tpu.memory_space<vmem>>, vector<1x256xf32>
    %5 = vector.broadcast %4 : vector<1x256xf32> to vector<16x256xf32>
    %6 = arith.addf %3, %5 : vector<16x256xf32>
    %cst_5 = arith.constant 0.000000e+00 : f32
    %7 = vector.broadcast %cst_5 : f32 to vector<16x256xf32>
    %8 = arith.cmpf ogt, %6, %7 : vector<16x256xf32>
    %cst_6 = arith.constant 0.00999999977 : f32
    %9 = vector.broadcast %cst_6 : f32 to vector<16x256xf32>
    %10 = arith.mulf %9, %6 : vector<16x256xf32>
    %11 = arith.select %8, %6, %10 : vector<16x256xi1>, vector<16x256xf32>
    %12 = arith.truncf %11 : vector<16x256xf32> to vector<16x256xbf16>
    %c0_7 = arith.constant 0 : index
    %c0_8 = arith.constant 0 : index
    %13 = vector.load %arg4[%c0_7, %c0_8] : memref<256x256xbf16, #tpu.memory_space<vmem>>, vector<256x256xbf16>
    %cst_9 = arith.constant dense<0.000000e+00> : vector<16x256xf32>
    %14 = tpu.matmul %12, %13, %cst_9 {dimension_numbers = #tpu.dot_dimension_numbers<[1], [0], [0], [1], [0, 0, 1, 1], [], []>} : vector<16x256xbf16>, vector<256x256xbf16>, vector<16x256xf32> -> vector<16x256xf32>
    %c0_10 = arith.constant 0 : index
    %c0_11 = arith.constant 0 : index
    %15 = vector.load %arg5[%c0_10, %c0_11] : memref<1x256xf32, #tpu.memory_space<vmem>>, vector<1x256xf32>
    %16 = vector.broadcast %15 : vector<1x256xf32> to vector<16x256xf32>
    %17 = arith.addf %14, %16 : vector<16x256xf32>
    %cst_12 = arith.constant 0.000000e+00 : f32
    %18 = vector.broadcast %cst_12 : f32 to vector<16x256xf32>
    %19 = arith.cmpf ogt, %17, %18 : vector<16x256xf32>
    %cst_13 = arith.constant 0.00999999977 : f32
    %20 = vector.broadcast %cst_13 : f32 to vector<16x256xf32>
    %21 = arith.mulf %20, %17 : vector<16x256xf32>
    %22 = arith.select %19, %17, %21 : vector<16x256xi1>, vector<16x256xf32>
    %23 = arith.truncf %22 : vector<16x256xf32> to vector<16x256xbf16>
    %c0_14 = arith.constant 0 : index
    %c0_15 = arith.constant 0 : index
    %24 = vector.load %arg6[%c0_14, %c0_15] : memref<256x9xbf16, #tpu.memory_space<vmem>>, vector<256x9xbf16>
    %cst_16 = arith.constant dense<0.000000e+00> : vector<16x9xf32>
    %25 = tpu.matmul %23, %24, %cst_16 {dimension_numbers = #tpu.dot_dimension_numbers<[1], [0], [0], [1], [0, 0, 1, 1], [], []>} : vector<16x256xbf16>, vector<256x9xbf16>, vector<16x9xf32> -> vector<16x9xf32>
    %c0_17 = arith.constant 0 : index
    %c0_18 = arith.constant 0 : index
    %26 = vector.load %arg7[%c0_17, %c0_18] : memref<1x9xf32, #tpu.memory_space<vmem>>, vector<1x9xf32>
    %27 = vector.broadcast %26 : vector<1x9xf32> to vector<16x9xf32>
    %28 = arith.addf %25, %27 : vector<16x9xf32>
    %c0_19 = arith.constant 0 : index
    %c0_20 = arith.constant 0 : index
    %29 = vector.load %arg8[%c0_19, %c0_20] : memref<16x9xf32, #tpu.memory_space<vmem>>, vector<16x9xf32>
    tpu.vector_store %arg8[%c0_19, %c0_20], %28 {strides = array<i32>} : memref<16x9xf32, #tpu.memory_space<vmem>>, vector<16x9xf32>,
    return
  }
  func.func @transform_0(%arg0: i32) -> (i32, i32) {
    %c0_i32 = arith.constant 0 : i32
    %c0_i32_0 = arith.constant 0 : i32
    return %arg0, %c0_i32 : i32, i32
  }
  func.func @transform_1(%arg0: i32) -> (i32, i32) {
    %c0_i32 = arith.constant 0 : i32
    %c0_i32_0 = arith.constant 0 : i32
    %c0_i32_1 = arith.constant 0 : i32
    return %c0_i32, %c0_i32_0 : i32, i32
  }
  func.func @transform_2(%arg0: i32) -> (i32, i32) {
    %c0_i32 = arith.constant 0 : i32
    %c0_i32_0 = arith.constant 0 : i32
    %c0_i32_1 = arith.constant 0 : i32
    return %c0_i32, %c0_i32_0 : i32, i32
  }
  func.func @transform_3(%arg0: i32) -> (i32, i32) {
    %c0_i32 = arith.constant 0 : i32
    %c0_i32_0 = arith.constant 0 : i32
    %c0_i32_1 = arith.constant 0 : i32
    return %c0_i32, %c0_i32_0 : i32, i32
  }
  func.func @transform_4(%arg0: i32) -> (i32, i32) {
    %c0_i32 = arith.constant 0 : i32
    %c0_i32_0 = arith.constant 0 : i32
    %c0_i32_1 = arith.constant 0 : i32
    return %c0_i32, %c0_i32_0 : i32, i32
  }
  func.func @transform_5(%arg0: i32) -> (i32, i32) {
    %c0_i32 = arith.constant 0 : i32
    %c0_i32_0 = arith.constant 0 : i32
    %c0_i32_1 = arith.constant 0 : i32
    return %c0_i32, %c0_i32_0 : i32, i32
  }
  func.func @transform_6(%arg0: i32) -> (i32, i32) {
    %c0_i32 = arith.constant 0 : i32
    %c0_i32_0 = arith.constant 0 : i32
    %c0_i32_1 = arith.constant 0 : i32
    return %c0_i32, %c0_i32_0 : i32, i32
  }
  func.func @transform_7(%arg0: i32) -> (i32, i32) {
    %c0_i32 = arith.constant 0 : i32
    %c0_i32_0 = arith.constant 0 : i32
    return %arg0, %c0_i32 : i32, i32
  }
}

</mosaic_0001>

<bundles_post_ra>
// kernel: net_forward.1
= control target key start
LH: loop header
LB: loop body
LE: loop exit
PB: predicated region body
PF: predicated region fallthrough
CT: control target
= control target key end

     0   :  { %12 = vsyncpa [#allocation3], 0  ;;  %s932_s0 = inlined_call_operand.vmem [shape: f32[8,26], index: 0, kind: input, shape index: {}]   ;;  %s933_s1 = inlined_call_operand.vmem [shape: bf16[26,256], index: 1, kind: input, shape index: {}]   ;;  %s934_s2 = inlined_call_operand.vmem [shape: f32[1,256], index: 2, kind: input, shape index: {}]   ;;  %s935_s3 = inlined_call_operand.hbm [shape: bf16[256,256], index: 3, kind: input, shape index: {}]   ;;  %s936_s4 = inlined_call_operand.vmem [shape: f32[1,256], index: 4, kind: input, shape index: {}]   ;;  %s937_s5 = inlined_call_operand.vmem [shape: bf16[256,9], index: 5, kind: input, shape index: {}]   ;;  %s938_s6 = inlined_call_operand.vmem [shape: f32[1,9], index: 6, kind: input, shape index: {}]   ;;  %s939_s7 = inlined_call_operand.hbm [shape: f32[8,9], index: 7, kind: output, shape index: {}]  }
   0x1   :  { %13 = vsyncpa [#allocation4], 0  ;;  %s800_s24 = smov [#allocation2]  }
   0x2   :  { %s25_s25 = sshll.u32 %s800_s24, 4  ;;  %s26_s25 = int_to_ptr.vmem [resolvable:$true] %s25_s25 }
   0x3   :  { %s764_s26 = scalar_lea.vmem %s26_s25, 4096  ;;  %p769_p1 = scmp.lt.s32.totalorder %s26_s25, %s26_s25 }
   0x4   :  { %p765_p0 = scmp.ne.s32.totalorder %s26_s25, %s764_s26  ;;  %p770_p2 = scmp.lt.s32.totalorder %s764_s26, %s764_s26 }
   0x6   :  { %p771_p3 = por %p770_p2, %p769_p1 }
   0x8   :  { %p772_p4 = pnand %p771_p3, %p765_p0 }
   0xa   :  { %775 = shalt.err (!%p772_p4)
}
   0xb   :  { %s801_s27 = smov 128   ;;  %s802_s28 = smov 8  }
   0xc   :  { %31 = dma.hbm_to_vmem [thread:$0]  %s935_s3, 4096, %s26_s25, [#allocation3], %s801_s27, %s801_s27, %s802_s28  }
   0xd   :  { %796 = dma.done.wait [#allocation3], 4096  }
   0xe   :  { %797 = vsyncadd [#allocation3], 4294963200  ;;  %v803_v0 = vmov 0   ;;  %vm83_vm0 = vcmask 1044480   ;;  %v689_v3 = vld [vmem:[%s933_s1 + $0x4] ss:$8 sps:$4 sm:$0xff]   ;;  %v51_v50 = vlaneseq }
   0xf   :  { %122 = vmatprep.mubr.bf16.mxu0 %v803_v0  ;;  %v686_v1 = vld [vmem:[%s933_s1 + $0x14] ss:$8 sps:$4 sm:$0x1f]   ;;  %v688_v2 = vld [vmem:[%s933_s1 + $0x10] ss:$8 sps:$4 sm:$0x1f]  }
  0x10   :  { %608 = vmatprep.subr.msk.bf16.mxu0 %vm83_vm0, %v686_v1  ;;  %v691_v4 = vld [vmem:[%s933_s1] ss:$8 sps:$4 sm:$0xff]   ;;  %v85_v6 = vsel %vm83_vm0, %v688_v2, 0  ;;  %v692_v8 = vld [vmem:[#allocation2 + $0x74] ss:$8 sps:$4 sm:$0xff]   ;;  %vm79_vm1 = vcmask 211968  }
  0x11   :  { %v42_v5 = vld [vmem:[%s932_s0] sm:$0xff]  ;;  %v43_v7 = vld [vmem:[%s932_s0 + $0x8] sm:$0xff]  ;;  %103 = vmatpush1.bf16.msra.mxu0 %v85_v6  ;;  %v694_v9 = vld [vmem:[#allocation2 + $0x70] ss:$8 sps:$4 sm:$0xff]   ;;  %351 = vmatprep.subr.bf16.mxu1 %v692_v8  ;;  %v52_v51 = vshrl.u32 %v51_v50, 7  ;;  %vm584_vm10 = vcmask 72704  }
  0x12   :  { %104 = vmatprep.subr.bf16.mxu0 %v689_v3  ;;  %v695_v10 = vld [vmem:[#allocation2 + $0x64] ss:$8 sps:$4 sm:$0xff]   ;;  %v44_v11 = vpack.c.bf16 %v43_v7, %v42_v5  ;;  %352 = vmatpush1.bf16.msra.mxu1 %v694_v9  ;;  %v697_v12 = vld [vmem:[#allocation2 + $0x60] ss:$8 sps:$4 sm:$0xff]   ;;  %v698_v13 = vld [vmem:[#allocation2 + $0x54] ss:$8 sps:$4 sm:$0xff]  }
  0x13   :  { %353 = vmatprep.subr.bf16.mxu1 %v695_v10  ;;  %v700_v14 = vld [vmem:[#allocation2 + $0x50] ss:$8 sps:$4 sm:$0xff]   ;;  %v701_v15 = vld [vmem:[#allocation2 + $0x44] ss:$8 sps:$4 sm:$0xff]   ;;  %v703_v16 = vld [vmem:[#allocation2 + $0x40] ss:$8 sps:$4 sm:$0xff]  }
  0x14   :  { %v704_v17 = vld [vmem:[#allocation2 + $0x34] ss:$8 sps:$4 sm:$0xff]   ;;  %v706_v18 = vld [vmem:[#allocation2 + $0x30] ss:$8 sps:$4 sm:$0xff]   ;;  %v707_v19 = vld [vmem:[#allocation2 + $0x24] ss:$8 sps:$4 sm:$0xff]  }
  0x15   :  { %105 = vmatpush1.bf16.msra.mxu0 %v691_v4  ;;  %v709_v20 = vld [vmem:[#allocation2 + $0x20] ss:$8 sps:$4 sm:$0xff]   ;;  %v710_v21 = vld [vmem:[#allocation2 + $0x14] ss:$8 sps:$4 sm:$0xff]   ;;  %v712_v22 = vld [vmem:[#allocation2 + $0x10] ss:$8 sps:$4 sm:$0xff]  }
  0x16   :  { %354 = vmatpush1.bf16.msra.mxu1 %v697_v12  ;;  %v713_v23 = vld [vmem:[#allocation2 + $0x4] ss:$8 sps:$4 sm:$0xff]   ;;  %v715_v24 = vld [vmem:[#allocation2] ss:$8 sps:$4 sm:$0xff]   ;;  %v716_v25 = vld [vmem:[#allocation2 + $0xf4] ss:$8 sps:$4 sm:$0xff]  }
  0x17   :  { %355 = vmatprep.subr.bf16.mxu1 %v698_v13  ;;  %v718_v26 = vld [vmem:[#allocation2 + $0xf0] ss:$8 sps:$4 sm:$0xff]   ;;  %v719_v27 = vld [vmem:[#allocation2 + $0xe4] ss:$8 sps:$4 sm:$0xff]   ;;  %v721_v28 = vld [vmem:[#allocation2 + $0xe0] ss:$8 sps:$4 sm:$0xff]  }
  0x18   :  { %609 = vmatmul.mubr.msk.bf16.vlgmr.msra.gmra.mxu0 %vm79_vm1, %v44_v11  ;;  %v722_v29 = vld [vmem:[#allocation2 + $0xd4] ss:$8 sps:$4 sm:$0xff]   ;;  %v724_v30 = vld [vmem:[#allocation2 + $0xd0] ss:$8 sps:$4 sm:$0xff]   ;;  %v725_v31 = vld [vmem:[#allocation2 + $0xc4] ss:$8 sps:$4 sm:$0xff]  }
  0x19   :  { %v727_v32 = vld [vmem:[#allocation2 + $0xc0] ss:$8 sps:$4 sm:$0xff]   ;;  %v728_v33 = vld [vmem:[#allocation2 + $0xb4] ss:$8 sps:$4 sm:$0xff]   ;;  %v730_v34 = vld [vmem:[#allocation2 + $0xb0] ss:$8 sps:$4 sm:$0xff]  }
  0x1a   :  { %356 = vmatpush1.bf16.msra.mxu1 %v700_v14  ;;  %v731_v35 = vld [vmem:[#allocation2 + $0xa4] ss:$8 sps:$4 sm:$0xff]   ;;  %v733_v36 = vld [vmem:[#allocation2 + $0xa0] ss:$8 sps:$4 sm:$0xff]   ;;  %v734_v37 = vld [vmem:[#allocation2 + $0x94] ss:$8 sps:$4 sm:$0xff]  }
  0x1b   :  { %357 = vmatprep.subr.bf16.mxu1 %v701_v15  ;;  %v736_v38 = vld [vmem:[#allocation2 + $0x90] ss:$8 sps:$4 sm:$0xff]   ;;  %v737_v39 = vld [vmem:[#allocation2 + $0x84] ss:$8 sps:$4 sm:$0xff]   ;;  %v739_v40 = vld [vmem:[#allocation2 + $0x80] ss:$8 sps:$4 sm:$0xff]  }
  0x1c   :  { %v740_v41 = vld [vmem:[%s937_s5 + $0x78] sm:$0xff]   ;;  %v742_v43 = vld [vmem:[%s937_s5 + $0x70] sm:$0xff]   ;;  %v744_v45 = vld [vmem:[%s937_s5 + $0x68] sm:$0xff]   ;;  %v57_v52 = vsub.s32 1, %v52_v51  ;;  %v53_v53 = vsub.s32 0, %v52_v51 }
  0x1d   :  { %v741_v42 = vld [vmem:[%s937_s5 + $0x38] sm:$0xff]   ;;  %659 = vmatprep.subr.bf16.mxu0 %v740_v41  ;;  %v743_v44 = vld [vmem:[%s937_s5 + $0x30] sm:$0xff]   ;;  %v745_v46 = vld [vmem:[%s937_s5 + $0x28] sm:$0xff]  }
  0x1e   :  { %358 = vmatpush1.bf16.msra.mxu1 %v703_v16  ;;  %660 = vmatpush3.bf16.msra.mxu0 %v741_v42  ;;  %v746_v47 = vld [vmem:[%s937_s5 + $0x60] sm:$0xff]   ;;  %v748_v49 = vld [vmem:[%s937_s5 + $0x58] sm:$0xff]   ;;  %v750_v12 = vld [vmem:[%s937_s5 + $0x50] sm:$0xff]  }
  0x1f   :  { %359 = vmatprep.subr.bf16.mxu1 %v704_v17  ;;  %661 = vmatprep.subr.bf16.mxu0 %v742_v43  ;;  %v747_v48 = vld [vmem:[%s937_s5 + $0x20] sm:$0xff]   ;;  %v749_v11 = vld [vmem:[%s937_s5 + $0x18] sm:$0xff]   ;;  %v751_v13 = vld [vmem:[%s937_s5 + $0x10] sm:$0xff]  }
  0x20   :  { %v49_v54 = vld [vmem:[%s934_s2] sm:$0x3]  ;;  %v752_v14 = vld [vmem:[%s937_s5 + $0x48] sm:$0xff]  }
  0x21   :  { %v58_v55 = vrot.slane %v49_v54, %v57_v52  ;;  %v54_v56 = vrot.slane %v49_v54, %v53_v53  ;;  %v753_v15 = vld [vmem:[%s937_s5 + $0x8] sm:$0xff]   ;;  %v754_v16 = vld [vmem:[%s937_s5 + $0x40] sm:$0xff]  }
  0x22   :  { %360 = vmatpush1.bf16.msra.mxu1 %v706_v18  ;;  %662 = vmatpush3.bf16.msra.mxu0 %v743_v44  ;;  %v755_v17 = vld [vmem:[%s937_s5] sm:$0xff]  }
  0x23   :  { %361 = vmatprep.subr.bf16.mxu1 %v707_v19  ;;  %663 = vmatprep.subr.bf16.mxu0 %v744_v45  ;;  %v179_v18 = vld [vmem:[%s936_s4] sm:$0x3] }
  0x24   :  { %v188_v19 = vrot.slane %v179_v18, %v57_v52 }
  0x26   :  { %362 = vmatpush1.bf16.msra.mxu1 %v709_v20  ;;  %664 = vmatpush3.bf16.msra.mxu0 %v745_v46  ;;  %v184_v20 = vrot.slane %v179_v18, %v53_v53 }
  0x27   :  { %363 = vmatprep.subr.bf16.mxu1 %v710_v21  ;;  %665 = vmatprep.subr.bf16.mxu0 %v746_v47 }
  0x2a   :  { %364 = vmatpush1.bf16.msra.mxu1 %v712_v22  ;;  %666 = vmatpush3.bf16.msra.mxu0 %v747_v48 }
  0x2b   :  { %365 = vmatprep.subr.bf16.mxu1 %v713_v23  ;;  %667 = vmatprep.subr.bf16.mxu0 %v748_v49 }
  0x2e   :  { %366 = vmatpush1.bf16.msra.mxu1 %v715_v24  ;;  %668 = vmatpush3.bf16.msra.mxu0 %v749_v11 }
  0x2f   :  { %367 = vmatprep.subr.bf16.mxu1 %v716_v25  ;;  %669 = vmatprep.subr.bf16.mxu0 %v750_v12 }
  0x32   :  { %368 = vmatpush2.bf16.msra.mxu1 %v718_v26  ;;  %670 = vmatpush3.bf16.msra.mxu0 %v751_v13 }
  0x33   :  { %369 = vmatprep.subr.bf16.mxu1 %v719_v27  ;;  %671 = vmatprep.subr.bf16.mxu0 %v752_v14 }
  0x36   :  { %370 = vmatpush2.bf16.msra.mxu1 %v721_v28  ;;  %672 = vmatpush3.bf16.msra.mxu0 %v753_v15 }
  0x37   :  { %371 = vmatprep.subr.bf16.mxu1 %v722_v29  ;;  %673 = vmatprep.subr.bf16.mxu0 %v754_v16 }
  0x3a   :  { %372 = vmatpush2.bf16.msra.mxu1 %v724_v30  ;;  %674 = vmatpush3.bf16.msra.mxu0 %v755_v17 }
  0x3b   :  { %373 = vmatprep.subr.bf16.mxu1 %v725_v31 }
  0x3e   :  { %374 = vmatpush2.bf16.msra.mxu1 %v727_v32 }
  0x3f   :  { %375 = vmatprep.subr.bf16.mxu1 %v728_v33 }
  0x42   :  { %376 = vmatpush2.bf16.msra.mxu1 %v730_v34 }
  0x43   :  { %377 = vmatprep.subr.bf16.mxu1 %v731_v35 }
  0x46   :  { %378 = vmatpush2.bf16.msra.mxu1 %v733_v36 }
  0x47   :  { %379 = vmatprep.subr.bf16.mxu1 %v734_v37 }
  0x4a   :  { %380 = vmatpush2.bf16.msra.mxu1 %v736_v38 }
  0x4b   :  { %381 = vmatprep.subr.bf16.mxu1 %v737_v39 }
  0x4e   :  { %382 = vmatpush2.bf16.msra.mxu1 %v739_v40  ;;  %v642_v40 = vld [vmem:[%s938_s6] ss:$0 sm:$0xff] }
  0xd8   :  { %v124_v57 = vpop.f32.mrf.mxu0 }
  0xd9   :  { %v125_v60 = vadd.f32 %v124_v57, %v54_v56 }
  0xda   :  { %v126_v58 = vpop.f32.mrf.mxu0 }
  0xdb   :  { %v127_v59 = vadd.f32 %v126_v58, %v58_v55  ;;  %v137_v3 = vmul.f32 0.01, %v125_v60  ;;  %vm133_vm4 = vcmp.gt.f32.partialorder %v125_v60, 0.0 }
  0xdc   :  { %v128_v61 = vpop.f32.mrf.mxu0 }
  0xdd   :  { %v129_v62 = vadd.f32 %v128_v61, %v54_v56  ;;  %v138_v0 = vmul.f32 0.01, %v127_v59  ;;  %vm134_vm3 = vcmp.gt.f32.partialorder %v127_v59, 0.0  ;;  %v141_v9 = vsel %vm133_vm4, %v125_v60, %v137_v3 }
  0xde   :  { %v130_v63 = vpop.f32.mrf.mxu0 }
  0xdf   :  { %vm135_vm2 = vcmp.gt.f32.partialorder %v129_v62, 0.0  ;;  %v139_v1 = vmul.f32 0.01, %v129_v62  ;;  %v131_v2 = vadd.f32 %v130_v63, %v58_v55  ;;  %v142_v6 = vsel %vm134_vm3, %v127_v59, %v138_v0 }
  0xe1   :  { %v140_v4 = vmul.f32 0.01, %v131_v2  ;;  %vm136_vm5 = vcmp.gt.f32.partialorder %v131_v2, 0.0  ;;  %v143_v5 = vsel %vm135_vm2, %v129_v62, %v139_v1 }
  0xe2   :  { %v145_v10 = vpack.c.bf16 %v143_v5, %v141_v9 }
  0xe3   :  { %v144_v7 = vsel %vm136_vm5, %v131_v2, %v140_v4 }
  0xe4   :  { %v146_v8 = vpack.c.bf16 %v144_v7, %v142_v6 }
  0xe6   :  { %383 = vmatprep.mubr.bf16.mxu1 %v146_v8 }
  0xe7   :  { %384 = vmatmul.mubr.bf16.vlgmr.msra.gmra.mxu1 %v145_v10 }
 0x1a7   :  { %v385_v21 = vpop.f32.mrf.mxu1 }
 0x1a8   :  { %v386_v24 = vadd.f32 %v385_v21, %v184_v20 }
 0x1a9   :  { %v387_v22 = vpop.f32.mrf.mxu1 }
 0x1aa   :  { %v388_v23 = vadd.f32 %v387_v22, %v188_v19  ;;  %v398_v31 = vmul.f32 0.01, %v386_v24  ;;  %vm394_vm8 = vcmp.gt.f32.partialorder %v386_v24, 0.0 }
 0x1ab   :  { %v389_v25 = vpop.f32.mrf.mxu1 }
 0x1ac   :  { %v390_v26 = vadd.f32 %v389_v25, %v184_v20  ;;  %v399_v28 = vmul.f32 0.01, %v388_v23  ;;  %vm395_vm7 = vcmp.gt.f32.partialorder %v388_v23, 0.0  ;;  %v402_v36 = vsel %vm394_vm8, %v386_v24, %v398_v31 }
 0x1ad   :  { %v391_v27 = vpop.f32.mrf.mxu1 }
 0x1ae   :  { %vm396_vm6 = vcmp.gt.f32.partialorder %v390_v26, 0.0  ;;  %v400_v29 = vmul.f32 0.01, %v390_v26  ;;  %v392_v30 = vadd.f32 %v391_v27, %v188_v19  ;;  %v403_v34 = vsel %vm395_vm7, %v388_v23, %v399_v28 }
 0x1b0   :  { %vm397_vm9 = vcmp.gt.f32.partialorder %v392_v30, 0.0  ;;  %v401_v32 = vmul.f32 0.01, %v392_v30  ;;  %v404_v33 = vsel %vm396_vm6, %v390_v26, %v400_v29 }
 0x1b1   :  { %v406_v38 = vpack.c.bf16 %v404_v33, %v402_v36 }
 0x1b2   :  { %v405_v35 = vsel %vm397_vm9, %v392_v30, %v401_v32 }
 0x1b3   :  { %v407_v37 = vpack.c.bf16 %v405_v35, %v403_v34 }
 0x1b5   :  { %575 = vmatprep.mubr.bf16.mxu0 %v407_v37 }
 0x1b6   :  { %576 = vmatmul.mubr.bf16.vlgmr.msra.gmra.mxu0 %v406_v38 }
 0x276   :  { %v675_v39 = vpop.f32.mrf.mxu0 }
 0x278   :  { %v676_v41 = vpop.f32.mrf.mxu0 }
 0x279   :  { %v677_v42 = vadd.f32 %v676_v41, %v675_v39 }
 0x27a   :  { %v678_v43 = vpop.f32.mrf.mxu0 }
 0x27b   :  { %v578_v44 = vadd.f32 %v677_v42, %v642_v40 }
 0x27c   :  { %v679_v45 = vpop.f32.mrf.mxu0 }
 0x27d   :  { %585 = vst.msk [vmem:[#allocation5] sm:$0xff] %vm584_vm10, %v578_v44  ;;  %v680_v46 = vadd.f32 %v679_v45, %v678_v43 }
 0x27f   :  { %v581_v47 = vadd.f32 %v680_v46, %v642_v40 }
 0x281   :  { %586 = vst.msk [vmem:[#allocation5 + $0x8] sm:$0xff] %vm584_vm10, %v581_v47 }
 0x282   :  { %591 = vsyncadd [#allocation4], 128  ;;  %s804_s30 = smov [#allocation5]  }
 0x283   :  { %s592_s8 = sshll.u32 %s804_s30, 4  ;;  %s593_s8 = int_to_ptr.vmem [resolvable:$true] %s592_s8 }
 0x284   :  { %s776_s9 = scalar_lea.vmem %s593_s8, 128  ;;  %s780_s10 = scalar_lea.vmem %s593_s8, 256 }
 0x285   :  { %p777_p5 = scmp.ne.s32.totalorder %s593_s8, %s776_s9  ;;  %p781_p6 = scmp.lt.s32.totalorder %s593_s8, %s593_s8 }
 0x286   :  { %p782_p7 = scmp.lt.s32.totalorder %s780_s10, %s776_s9 }
 0x288   :  { %p783_p8 = por %p782_p7, %p781_p6 }
 0x28a   :  { %p784_p9 = pnand %p783_p8, %p777_p5 }
 0x28c   :  { %787 = shalt.err (!%p784_p9)
}
 0x28d   :  { %598 = dma.vmem_to_hbm [thread:$0]  %s593_s8, 128, %s939_s7, [#allocation4], %s801_s27, %s801_s27, %s802_s28  }
 0x28e   :  { %798 = dma.done.wait [#allocation4], 256  }
 0x28f   :  { %799 = vsyncadd [#allocation4], 4294967040 }
 0x290   :  { %602 = vsyncpa [#allocation3], 1 }
 0x291   :  { %603 = vsyncpa [#allocation4], 1 }

</bundles_post_ra>
